<compile_context>
chip_gen: v5e
topology: v5e:2x2
jax: 0.10.0
libtpu: 0.0.40
codegen_flags: <defaults>
</compile_context>

<pallas_src>
import jax
import jax.numpy as jnp
from jax.experimental import pallas as pl
from jax.experimental.pallas import tpu as pltpu

LN_EPS = 1e-5


def _round_up(x, m):
    return ((x + m - 1) // m) * m


def _pick_vocab_tile(V, tn_max, waste_frac=0.02):
    """Largest vocab tile (multiple of 128, <= tn_max) with small padding waste."""
    tn_max = max(128, (min(tn_max, _round_up(V, 128)) // 128) * 128)
    best_tn, best_pad = 128, _round_up(V, 128)        # minimal possible padding
    for tn in range(tn_max, 127, -128):
        pad = _round_up(V, tn)
        if pad - V <= waste_frac * V:
            return tn, pad
        if pad == best_pad and tn > best_tn:
            best_tn, best_pad = tn, pad
    return best_tn, best_pad


def _pick_row_tile(M, tm_max, waste_frac=0.04):
    """Row tile: a single tile if M fits, else a 128-granular padding-aware search."""
    M8 = _round_up(M, 8)
    if M8 <= tm_max:
        return M8, M8
    tm_max = max(128, (tm_max // 128) * 128)
    best_tm, best_pad = 128, _round_up(M, 128)
    for tm in range(tm_max, 127, -128):
        pad = _round_up(M, tm)
        if pad - M <= waste_frac * M:
            return tm, pad
        if pad == best_pad and tm > best_tm:
            best_tm, best_pad = tm, pad
    return best_tm, best_pad


def _vmem_limit_bytes(est_bytes):
    """Explicit VMEM limit: >= 1.5x the estimate, capped at 75% of physical VMEM."""
    cap = 64 * 2**20                      # conservative default (v7x per-core VMEM)
    try:
        info = pltpu.get_tpu_info()
        cap = int(getattr(info, "vmem_capacity_bytes", cap) or cap)
    except Exception:
        pass
    return int(min(int(cap * 0.75), max(32 * 2**20, int(est_bytes * 1.5))))


# ----------------------------- kernels ---------------------------------------


def hidden_kernel(x_ref, w1_ref, b1_ref, gamma_ref, beta_ref, h_ref):
    # x: (tm, E) f32   w1: (E, E) f32   b1/gamma/beta: (1, E) f32   h: (tm, E) bf16
    x = x_ref[...]
    h = jnp.dot(x, w1_ref[...], preferred_element_type=jnp.float32) + b1_ref[...]
    h = jnp.maximum(h, 0.0)
    # LayerNorm over the feature dim (biased variance, PyTorch semantics), f32.
    mean = jnp.mean(h, axis=-1, keepdims=True)
    var = jnp.mean((h - mean) ** 2, axis=-1, keepdims=True)
    ln = (h - mean) * jax.lax.rsqrt(var + LN_EPS)
    ln = ln * gamma_ref[...] + beta_ref[...]
    h_ref[...] = ln.astype(h_ref.dtype)


def logits_kernel(h_ref, w2_ref, b2_ref, o_ref):
    # h: (tm, E) bf16   w2: (E, tn) bf16   b2: (1, tn) f32   o: (tm, tn) out_dtype
    y = jnp.dot(h_ref[...], w2_ref[...], preferred_element_type=jnp.float32)
    o_ref[...] = (y + b2_ref[...]).astype(o_ref.dtype)


def _hidden_pallas_call(tm, M_pad, E, vmem_limit, single_buffer_consts):
    const_kw = {}
    if single_buffer_consts:
        # Grid-invariant operands: a second pipeline buffer is pure VMEM waste.
        const_kw = dict(pipeline_mode=pl.Buffered(1))
    return pl.pallas_call(
        hidden_kernel,
        out_shape=jax.ShapeDtypeStruct((M_pad, E), jnp.bfloat16),
        grid_spec=pltpu.PrefetchScalarGridSpec(
            num_scalar_prefetch=0,
            grid=(M_pad // tm,),
            in_specs=[
                pl.BlockSpec((tm, E), lambda i: (i, 0)),              # gathered tokens
                pl.BlockSpec((E, E), lambda i: (0, 0), **const_kw),   # W1 (resident)
                pl.BlockSpec((1, E), lambda i: (0, 0), **const_kw),   # b1
                pl.BlockSpec((1, E), lambda i: (0, 0), **const_kw),   # gamma
                pl.BlockSpec((1, E), lambda i: (0, 0), **const_kw),   # beta
            ],
            out_specs=pl.BlockSpec((tm, E), lambda i: (i, 0)),
        ),
        compiler_params=pltpu.CompilerParams(
            dimension_semantics=("parallel",),
            vmem_limit_bytes=vmem_limit),
    )


# ----------------------------- forward ---------------------------------------


def masklm_forward(X, pred_positions, params, *, tm=512, tn=4096,
                   out_dtype=jnp.bfloat16):
    """Equivalent of MaskLM.forward.

    X:              (B, S, E) float32
    pred_positions: (B, P)    int32
    returns         (B, P, vocab_size) in `out_dtype`

    tm: row-tile target (512 on all generations; shrinking it on v5e only
        multiplies per-step overhead without saving FLOPs).
    tn: vocab-tile target (actual tile is chosen <= tn to minimize padding).
    out_dtype: bf16 by default (halves the dominant (M, V) logit writeback on
        v6e); use jnp.float32 for the exact PyTorch output dtype.
    """
    B, S, E = X.shape
    P = pred_positions.shape[1]
    w1, b1, gamma, beta, w2, b2 = params
    V = w2.shape[1]
    M = B * P

    tm_eff, M_pad = _pick_row_tile(M, tm)
    tn_eff, V_pad = _pick_vocab_tile(V, tn)

    # --- position gather (plain-JAX glue, mirrors the torch fancy indexing).
    # Row padding is folded into the same gather (padded rows replicate row 0,
    # so LayerNorm never sees a degenerate all-zero row); padded rows/columns
    # are sliced off at the end and never reach a loss.
    # TODO(synk): fuse this gather into the hidden kernel via scalar-prefetched
    # row indices + per-row DMA; it is secondary traffic vs streaming W2.
    pred_flat = pred_positions.reshape(-1).astype(jnp.int32)
    batch_idx = jnp.repeat(jnp.arange(B, dtype=jnp.int32), P)
    flat_idx = jnp.pad(batch_idx * S + pred_flat, (0, M_pad - M))
    x_p = X.reshape(B * S, E)[flat_idx]                          # (M_pad, E) f32

    # bf16 MXU operands for the big Linear2; biases stay f32.
    w2_p = jnp.pad(w2.astype(jnp.bfloat16), ((0, 0), (0, V_pad - V)))
    b2_p = jnp.pad(b2, ((0, 0), (0, V_pad - V)))

    # ---------------- Kernel A: Linear1 (f32) + ReLU + LayerNorm -> bf16 -----
    est_a = (2 * tm_eff * E * 4          # x tiles (f32, double-buffered)
             + 2 * E * E * 4             # W1 (f32; single buffer if Buffered(1))
             + 2 * tm_eff * E * 2        # hidden output tiles (bf16)
             + 8 * E * 4)                # b1 / gamma / beta
    vmem_a = _vmem_limit_bytes(est_a)
    try:
        hidden = _hidden_pallas_call(tm_eff, M_pad, E, vmem_a, True)(
            x_p, w1, b1, gamma, beta)
    except Exception:
        # Fallback for JAX versions that reject pipeline_mode=pl.Buffered(1).
        hidden = _hidden_pallas_call(tm_eff, M_pad, E, vmem_a, False)(
            x_p, w1, b1, gamma, beta)

    # ---------------- Kernel B: hidden @ W2 + b2 (vocab OUTER, rows INNER) ---
    out_bytes = jnp.dtype(out_dtype).itemsize
    est_b = (2 * tm_eff * E * 2                 # hidden tiles (bf16)
             + 2 * E * tn_eff * 2               # W2 vocab tiles (bf16)
             + 2 * tm_eff * tn_eff * out_bytes  # output tiles
             + 2 * tn_eff * 4)                  # b2 tile
    vmem_b = _vmem_limit_bytes(est_b)

    # Vocab on the OUTER axis: each W2 tile is fetched from HBM exactly once and
    # stays resident across the inner row sweep.  Both axes are "parallel"
    # (megacore-friendly on v7x); the padding-minimizing tn choice usually keeps
    # the outer extent even, so the 2 TensorCores stay balanced.
    grid_b = (V_pad // tn_eff, M_pad // tm_eff)
    logits = pl.pallas_call(
        logits_kernel,
        out_shape=jax.ShapeDtypeStruct((M_pad, V_pad), out_dtype),
        grid_spec=pltpu.PrefetchScalarGridSpec(
            num_scalar_prefetch=0,
            grid=grid_b,
            in_specs=[
                pl.BlockSpec((tm_eff, E), lambda j, i: (i, 0)),   # hidden tile
                pl.BlockSpec((E, tn_eff), lambda j, i: (0, j)),   # W2 tile (streamed once)
                pl.BlockSpec((1, tn_eff), lambda j, i: (0, j)),   # b2 tile
            ],
            out_specs=pl.BlockSpec((tm_eff, tn_eff), lambda j, i: (i, j)),
        ),
        compiler_params=pltpu.CompilerParams(
            dimension_semantics=("parallel", "parallel"),
            vmem_limit_bytes=vmem_b),
    )(hidden, w2_p, b2_p)

    # Strip row / vocab padding (padded logits must never reach a loss).
    return logits[:M, :V].reshape(B, P, V)


# ----------------------------- params / reference ----------------------------


def init_params(key, embed_dim, vocab_size):
    k1, k2, k3, k4 = jax.random.split(key, 4)
    scale1 = 1.0 / jnp.sqrt(embed_dim)
    # Weights stored as (in, out) so the kernel does x @ W directly.
    w1 = jax.random.uniform(k1, (embed_dim, embed_dim), jnp.float32,
                            -scale1, scale1)
    b1 = jax.random.uniform(k2, (1, embed_dim), jnp.float32, -scale1, scale1)
    gamma = jnp.ones((1, embed_dim), jnp.float32)
    beta = jnp.zeros((1, embed_dim), jnp.float32)
    w2 = jax.random.uniform(k3, (embed_dim, vocab_size), jnp.float32,
                            -scale1, scale1)
    b2 = jax.random.uniform(k4, (1, vocab_size), jnp.float32, -scale1, scale1)
    return (w1, b1, gamma, beta, w2, b2)


def _mlp_ref(mx, params, *, bf16_hidden, out_dtype=jnp.float32):
    """MLP head reference; optionally emulates the kernel's bf16 hidden handoff."""
    w1, b1, gamma, beta, w2, b2 = params
    h = jnp.dot(mx, w1, preferred_element_type=jnp.float32) + b1
    h = jnp.maximum(h, 0.0)
    mean = jnp.mean(h, axis=-1, keepdims=True)
    var = jnp.mean((h - mean) ** 2, axis=-1, keepdims=True)
    ln = (h - mean) / jnp.sqrt(var + LN_EPS) * gamma + beta
    if bf16_hidden:
        ln = ln.astype(jnp.bfloat16)
        w2 = w2.astype(jnp.bfloat16)
    y = jnp.dot(ln, w2, preferred_element_type=jnp.float32) + b2
    return y.astype(out_dtype)


def masklm_reference(X, pred_positions, params, *, bf16_hidden=False,
                     out_dtype=jnp.float32):
    """Pure-JAX reference mirroring the PyTorch module."""
    B, S, E = X.shape
    P = pred_positions.shape[1]
    pred_flat = pred_positions.reshape(-1)
    batch_idx = jnp.repeat(jnp.arange(B), P)
    mx = X[batch_idx, pred_flat]                       # (B*P, E)
    y = _mlp_ref(mx, params, bf16_hidden=bf16_hidden, out_dtype=out_dtype)
    return y.reshape(B, P, -1)


if __name__ == "__main__":
    # Small shapes consistent with the module's forward. num_pred / vocab_size
    # intentionally exercise the ragged-row and ragged-vocab padding paths.
    batch, seq, embed_dim = 2, 16, 32
    num_pred, vocab_size = 5, 100

    key = jax.random.PRNGKey(0)
    kx, kp, kw = jax.random.split(key, 3)

    X = jax.random.normal(kx, (batch, seq, embed_dim), jnp.float32)
    pred_positions = jax.random.randint(kp, (batch, num_pred), 0, seq,
                                        dtype=jnp.int32)
    params = init_params(kw, embed_dim, vocab_size)

    # Default path: bf16 logits (perf-recommended output dtype).
    out = jax.block_until_ready(masklm_forward(X, pred_positions, params))
    assert out.shape == (batch, num_pred, vocab_size)
    assert out.dtype == jnp.bfloat16
    out_f32 = out.astype(jnp.float32)
    assert bool(jnp.all(jnp.isfinite(out_f32)))

    # Tight check vs a reference matching the kernel's bf16 hidden/output.
    ref_match = masklm_reference(X, pred_positions, params, bf16_hidden=True,
                                 out_dtype=jnp.bfloat16).astype(jnp.float32)
    assert jnp.allclose(out_f32, ref_match, atol=2e-2, rtol=2e-2)

    # Loose check vs the pure-f32 PyTorch-equivalent reference.
    ref_f32 = masklm_reference(X, pred_positions, params)
    assert jnp.allclose(out_f32, ref_f32, atol=1e-1, rtol=1e-1)

    # f32-output path (exact original output dtype).
    out32 = jax.block_until_ready(
        masklm_forward(X, pred_positions, params, out_dtype=jnp.float32))
    assert out32.dtype == jnp.float32
    assert jnp.allclose(out32, ref_f32, atol=5e-2, rtol=5e-2)

    print("KERNEL_OK")
</pallas_src>

<mosaic_0001>
module attributes {stable_mosaic.version = 11 : i64} {
  func.func @hidden_kernel(%arg0: i32, %arg1: memref<16x32xf32, #tpu.memory_space<vmem>>, %arg2: memref<32x32xf32, #tpu.memory_space<vmem>>, %arg3: memref<1x32xf32, #tpu.memory_space<vmem>>, %arg4: memref<1x32xf32, #tpu.memory_space<vmem>>, %arg5: memref<1x32xf32, #tpu.memory_space<vmem>>, %arg6: memref<16x32xbf16, #tpu.memory_space<vmem>>) attributes {dimension_semantics = [#tpu.dimension_semantics<parallel>], iteration_bounds = array<i64: 1>, scalar_prefetch = 0 : i64, scratch_operands = 0 : i64, tpu.core_type = #tpu.core_type<tc>, window_params = [{transform_indices = @transform_0, window_bounds = array<i64: 16, 32>}, {pipeline_mode = #tpu.pipeline_mode<synchronous>, transform_indices = @transform_1, window_bounds = array<i64: 32, 32>}, {pipeline_mode = #tpu.pipeline_mode<synchronous>, transform_indices = @transform_2, window_bounds = array<i64: 1, 32>}, {pipeline_mode = #tpu.pipeline_mode<synchronous>, transform_indices = @transform_3, window_bounds = array<i64: 1, 32>}, {pipeline_mode = #tpu.pipeline_mode<synchronous>, transform_indices = @transform_4, window_bounds = array<i64: 1, 32>}, {transform_indices = @transform_5, window_bounds = array<i64: 16, 32>}]} {
    %c0 = arith.constant 0 : index
    %c0_0 = arith.constant 0 : index
    %0 = vector.load %arg1[%c0, %c0_0] : memref<16x32xf32, #tpu.memory_space<vmem>>, vector<16x32xf32>
    %c0_1 = arith.constant 0 : index
    %c0_2 = arith.constant 0 : index
    %1 = vector.load %arg2[%c0_1, %c0_2] : memref<32x32xf32, #tpu.memory_space<vmem>>, vector<32x32xf32>
    %cst = arith.constant dense<0.000000e+00> : vector<16x32xf32>
    %2 = tpu.matmul %0, %1, %cst {dimension_numbers = #tpu.dot_dimension_numbers<[1], [0], [0], [1], [0, 0, 1, 1], [], []>} : vector<16x32xf32>, vector<32x32xf32>, vector<16x32xf32> -> vector<16x32xf32>
    %c0_3 = arith.constant 0 : index
    %c0_4 = arith.constant 0 : index
    %3 = vector.load %arg3[%c0_3, %c0_4] : memref<1x32xf32, #tpu.memory_space<vmem>>, vector<1x32xf32>
    %4 = vector.broadcast %3 : vector<1x32xf32> to vector<16x32xf32>
    %5 = arith.addf %2, %4 : vector<16x32xf32>
    %cst_5 = arith.constant 0.000000e+00 : f32
    %6 = vector.broadcast %cst_5 : f32 to vector<16x32xf32>
    %7 = arith.maximumf %5, %6 : vector<16x32xf32>
    %cst_6 = arith.constant dense<0.000000e+00> : vector<16xf32>
    %8 = vector.multi_reduction <add>, %7, %cst_6 [1] : vector<16x32xf32> to vector<16xf32>
    %9 = vector.shape_cast %8 : vector<16xf32> to vector<16x1xf32>
    %cst_7 = arith.constant 3.200000e+01 : f32
    %10 = vector.broadcast %cst_7 : f32 to vector<16x1xf32>
    %11 = arith.divf %9, %10 : vector<16x1xf32>
    %12 = vector.broadcast %11 : vector<16x1xf32> to vector<16x32xf32>
    %13 = arith.subf %7, %12 : vector<16x32xf32>
    %14 = arith.mulf %13, %13 : vector<16x32xf32>
    %cst_8 = arith.constant dense<0.000000e+00> : vector<16xf32>
    %15 = vector.multi_reduction <add>, %14, %cst_8 [1] : vector<16x32xf32> to vector<16xf32>
    %16 = vector.shape_cast %15 : vector<16xf32> to vector<16x1xf32>
    %cst_9 = arith.constant 3.200000e+01 : f32
    %17 = vector.broadcast %cst_9 : f32 to vector<16x1xf32>
    %18 = arith.divf %16, %17 : vector<16x1xf32>
    %19 = vector.broadcast %11 : vector<16x1xf32> to vector<16x32xf32>
    %20 = arith.subf %7, %19 : vector<16x32xf32>
    %cst_10 = arith.constant 9.99999974E-6 : f32
    %21 = vector.broadcast %cst_10 : f32 to vector<16x1xf32>
    %22 = arith.addf %18, %21 : vector<16x1xf32>
    %23 = math.rsqrt %22 : vector<16x1xf32>
    %24 = vector.broadcast %23 : vector<16x1xf32> to vector<16x32xf32>
    %25 = arith.mulf %20, %24 : vector<16x32xf32>
    %c0_11 = arith.constant 0 : index
    %c0_12 = arith.constant 0 : index
    %26 = vector.load %arg4[%c0_11, %c0_12] : memref<1x32xf32, #tpu.memory_space<vmem>>, vector<1x32xf32>
    %27 = vector.broadcast %26 : vector<1x32xf32> to vector<16x32xf32>
    %28 = arith.mulf %25, %27 : vector<16x32xf32>
    %c0_13 = arith.constant 0 : index
    %c0_14 = arith.constant 0 : index
    %29 = vector.load %arg5[%c0_13, %c0_14] : memref<1x32xf32, #tpu.memory_space<vmem>>, vector<1x32xf32>
    %30 = vector.broadcast %29 : vector<1x32xf32> to vector<16x32xf32>
    %31 = arith.addf %28, %30 : vector<16x32xf32>
    %32 = arith.truncf %31 : vector<16x32xf32> to vector<16x32xbf16>
    %c0_15 = arith.constant 0 : index
    %c0_16 = arith.constant 0 : index
    %33 = vector.load %arg6[%c0_15, %c0_16] : memref<16x32xbf16, #tpu.memory_space<vmem>>, vector<16x32xbf16>
    tpu.vector_store %arg6[%c0_15, %c0_16], %32 {strides = array<i32>} : memref<16x32xbf16, #tpu.memory_space<vmem>>, vector<16x32xbf16>,
    return
  }
  func.func @transform_0(%arg0: i32) -> (i32, i32) {
    %c0_i32 = arith.constant 0 : i32
    %c0_i32_0 = arith.constant 0 : i32
    return %arg0, %c0_i32 : i32, i32
  }
  func.func @transform_1(%arg0: i32) -> (i32, i32) {
    %c0_i32 = arith.constant 0 : i32
    %c0_i32_0 = arith.constant 0 : i32
    %c0_i32_1 = arith.constant 0 : i32
    return %c0_i32, %c0_i32_0 : i32, i32
  }
  func.func @transform_2(%arg0: i32) -> (i32, i32) {
    %c0_i32 = arith.constant 0 : i32
    %c0_i32_0 = arith.constant 0 : i32
    %c0_i32_1 = arith.constant 0 : i32
    return %c0_i32, %c0_i32_0 : i32, i32
  }
  func.func @transform_3(%arg0: i32) -> (i32, i32) {
    %c0_i32 = arith.constant 0 : i32
    %c0_i32_0 = arith.constant 0 : i32
    %c0_i32_1 = arith.constant 0 : i32
    return %c0_i32, %c0_i32_0 : i32, i32
  }
  func.func @transform_4(%arg0: i32) -> (i32, i32) {
    %c0_i32 = arith.constant 0 : i32
    %c0_i32_0 = arith.constant 0 : i32
    %c0_i32_1 = arith.constant 0 : i32
    return %c0_i32, %c0_i32_0 : i32, i32
  }
  func.func @transform_5(%arg0: i32) -> (i32, i32) {
    %c0_i32 = arith.constant 0 : i32
    %c0_i32_0 = arith.constant 0 : i32
    return %arg0, %c0_i32 : i32, i32
  }
}

module attributes {stable_mosaic.version = 11 : i64} {
  func.func @hidden_kernel(%arg0: i32, %arg1: memref<16x32xf32, #tpu.memory_space<vmem>>, %arg2: memref<32x32xf32, #tpu.memory_space<vmem>>, %arg3: memref<1x32xf32, #tpu.memory_space<vmem>>, %arg4: memref<1x32xf32, #tpu.memory_space<vmem>>, %arg5: memref<1x32xf32, #tpu.memory_space<vmem>>, %arg6: memref<16x32xbf16, #tpu.memory_space<vmem>>) attributes {dimension_semantics = [#tpu.dimension_semantics<parallel>], iteration_bounds = array<i64: 1>, scalar_prefetch = 0 : i64, scratch_operands = 0 : i64, tpu.core_type = #tpu.core_type<tc>, window_params = [{transform_indices = @transform_0, window_bounds = array<i64: 16, 32>}, {pipeline_mode = #tpu.pipeline_mode<synchronous>, transform_indices = @transform_1, window_bounds = array<i64: 32, 32>}, {pipeline_mode = #tpu.pipeline_mode<synchronous>, transform_indices = @transform_2, window_bounds = array<i64: 1, 32>}, {pipeline_mode = #tpu.pipeline_mode<synchronous>, transform_indices = @transform_3, window_bounds = array<i64: 1, 32>}, {pipeline_mode = #tpu.pipeline_mode<synchronous>, transform_indices = @transform_4, window_bounds = array<i64: 1, 32>}, {transform_indices = @transform_5, window_bounds = array<i64: 16, 32>}]} {
    %c0 = arith.constant 0 : index
    %c0_0 = arith.constant 0 : index
    %0 = vector.load %arg1[%c0, %c0_0] : memref<16x32xf32, #tpu.memory_space<vmem>>, vector<16x32xf32>
    %c0_1 = arith.constant 0 : index
    %c0_2 = arith.constant 0 : index
    %1 = vector.load %arg2[%c0_1, %c0_2] : memref<32x32xf32, #tpu.memory_space<vmem>>, vector<32x32xf32>
    %cst = arith.constant dense<0.000000e+00> : vector<16x32xf32>
    %2 = tpu.matmul %0, %1, %cst {dimension_numbers = #tpu.dot_dimension_numbers<[1], [0], [0], [1], [0, 0, 1, 1], [], []>} : vector<16x32xf32>, vector<32x32xf32>, vector<16x32xf32> -> vector<16x32xf32>
    %c0_3 = arith.constant 0 : index
    %c0_4 = arith.constant 0 : index
    %3 = vector.load %arg3[%c0_3, %c0_4] : memref<1x32xf32, #tpu.memory_space<vmem>>, vector<1x32xf32>
    %4 = vector.broadcast %3 : vector<1x32xf32> to vector<16x32xf32>
    %5 = arith.addf %2, %4 : vector<16x32xf32>
    %cst_5 = arith.constant 0.000000e+00 : f32
    %6 = vector.broadcast %cst_5 : f32 to vector<16x32xf32>
    %7 = arith.maximumf %5, %6 : vector<16x32xf32>
    %cst_6 = arith.constant dense<0.000000e+00> : vector<16xf32>
    %8 = vector.multi_reduction <add>, %7, %cst_6 [1] : vector<16x32xf32> to vector<16xf32>
    %9 = vector.shape_cast %8 : vector<16xf32> to vector<16x1xf32>
    %cst_7 = arith.constant 3.200000e+01 : f32
    %10 = vector.broadcast %cst_7 : f32 to vector<16x1xf32>
    %11 = arith.divf %9, %10 : vector<16x1xf32>
    %12 = vector.broadcast %11 : vector<16x1xf32> to vector<16x32xf32>
    %13 = arith.subf %7, %12 : vector<16x32xf32>
    %14 = arith.mulf %13, %13 : vector<16x32xf32>
    %cst_8 = arith.constant dense<0.000000e+00> : vector<16xf32>
    %15 = vector.multi_reduction <add>, %14, %cst_8 [1] : vector<16x32xf32> to vector<16xf32>
    %16 = vector.shape_cast %15 : vector<16xf32> to vector<16x1xf32>
    %cst_9 = arith.constant 3.200000e+01 : f32
    %17 = vector.broadcast %cst_9 : f32 to vector<16x1xf32>
    %18 = arith.divf %16, %17 : vector<16x1xf32>
    %19 = vector.broadcast %11 : vector<16x1xf32> to vector<16x32xf32>
    %20 = arith.subf %7, %19 : vector<16x32xf32>
    %cst_10 = arith.constant 9.99999974E-6 : f32
    %21 = vector.broadcast %cst_10 : f32 to vector<16x1xf32>
    %22 = arith.addf %18, %21 : vector<16x1xf32>
    %23 = math.rsqrt %22 : vector<16x1xf32>
    %24 = vector.broadcast %23 : vector<16x1xf32> to vector<16x32xf32>
    %25 = arith.mulf %20, %24 : vector<16x32xf32>
    %c0_11 = arith.constant 0 : index
    %c0_12 = arith.constant 0 : index
    %26 = vector.load %arg4[%c0_11, %c0_12] : memref<1x32xf32, #tpu.memory_space<vmem>>, vector<1x32xf32>
    %27 = vector.broadcast %26 : vector<1x32xf32> to vector<16x32xf32>
    %28 = arith.mulf %25, %27 : vector<16x32xf32>
    %c0_13 = arith.constant 0 : index
    %c0_14 = arith.constant 0 : index
    %29 = vector.load %arg5[%c0_13, %c0_14] : memref<1x32xf32, #tpu.memory_space<vmem>>, vector<1x32xf32>
    %30 = vector.broadcast %29 : vector<1x32xf32> to vector<16x32xf32>
    %31 = arith.addf %28, %30 : vector<16x32xf32>
    %32 = arith.truncf %31 : vector<16x32xf32> to vector<16x32xbf16>
    %c0_15 = arith.constant 0 : index
    %c0_16 = arith.constant 0 : index
    %33 = vector.load %arg6[%c0_15, %c0_16] : memref<16x32xbf16, #tpu.memory_space<vmem>>, vector<16x32xbf16>
    tpu.vector_store %arg6[%c0_15, %c0_16], %32 {strides = array<i32>} : memref<16x32xbf16, #tpu.memory_space<vmem>>, vector<16x32xbf16>,
    return
  }
  func.func @transform_0(%arg0: i32) -> (i32, i32) {
    %c0_i32 = arith.constant 0 : i32
    %c0_i32_0 = arith.constant 0 : i32
    return %arg0, %c0_i32 : i32, i32
  }
  func.func @transform_1(%arg0: i32) -> (i32, i32) {
    %c0_i32 = arith.constant 0 : i32
    %c0_i32_0 = arith.constant 0 : i32
    %c0_i32_1 = arith.constant 0 : i32
    return %c0_i32, %c0_i32_0 : i32, i32
  }
  func.func @transform_2(%arg0: i32) -> (i32, i32) {
    %c0_i32 = arith.constant 0 : i32
    %c0_i32_0 = arith.constant 0 : i32
    %c0_i32_1 = arith.constant 0 : i32
    return %c0_i32, %c0_i32_0 : i32, i32
  }
  func.func @transform_3(%arg0: i32) -> (i32, i32) {
    %c0_i32 = arith.constant 0 : i32
    %c0_i32_0 = arith.constant 0 : i32
    %c0_i32_1 = arith.constant 0 : i32
    return %c0_i32, %c0_i32_0 : i32, i32
  }
  func.func @transform_4(%arg0: i32) -> (i32, i32) {
    %c0_i32 = arith.constant 0 : i32
    %c0_i32_0 = arith.constant 0 : i32
    %c0_i32_1 = arith.constant 0 : i32
    return %c0_i32, %c0_i32_0 : i32, i32
  }
  func.func @transform_5(%arg0: i32) -> (i32, i32) {
    %c0_i32 = arith.constant 0 : i32
    %c0_i32_0 = arith.constant 0 : i32
    return %arg0, %c0_i32 : i32, i32
  }
}

</mosaic_0001>

<bundles_post_ra>
// kernel: tpu_custom_call.1
= control target key start
LH: loop header
LB: loop body
LE: loop exit
PB: predicated region body
PF: predicated region fallthrough
CT: control target
= control target key end

     0   :  { %10 = vsyncpa [#allocation3], 0  ;;  %s346_s0 = inlined_call_operand.hbm [shape: f32[16,32], index: 0, kind: input, shape index: {}]   ;;  %s347_s1 = inlined_call_operand.hbm [shape: f32[32,32], index: 1, kind: input, shape index: {}]   ;;  %s348_s2 = inlined_call_operand.vmem [shape: f32[1,32], index: 2, kind: input, shape index: {}]   ;;  %s349_s3 = inlined_call_operand.vmem [shape: f32[1,32], index: 3, kind: input, shape index: {}]   ;;  %s350_s4 = inlined_call_operand.vmem [shape: f32[1,32], index: 4, kind: input, shape index: {}]   ;;  %s351_s5 = inlined_call_operand.hbm [shape: bf16[16,32], index: 5, kind: output, shape index: {}]  }
   0x1   :  { %11 = vsyncpa [#allocation6], 0 }
   0x2   :  { %12 = vsyncpa [#allocation4], 0  ;;  %s17_s20 = sshll.u32 %s346_s0, 4  ;;  %s284_s21 = smov [#allocation2]   ;;  %s18_s20 = int_to_ptr.hbm [resolvable:$true] %s17_s20 }
   0x3   :  { %s19_s22 = sshll.u32 %s284_s21, 4  ;;  %s30_s25 = sshll.u32 %s347_s1, 4  ;;  %s20_s22 = int_to_ptr.vmem [resolvable:$true] %s19_s22  ;;  %s31_s25 = int_to_ptr.hbm [resolvable:$true] %s30_s25 }
   0x4   :  { %s285_s26 = smov 128   ;;  %s286_s27 = smov 8  }
   0x5   :  { %25 = dma.hbm_to_vmem [thread:$0]  %s18_s20, 256, %s20_s22, [#allocation3], %s285_s26, %s285_s26, %s286_s27  }
   0x6   :  { %s287_s28 = smov [#allocation5]  }
   0x7   :  { %s32_s29 = sshll.u32 %s287_s28, 4  ;;  %s33_s29 = int_to_ptr.vmem [resolvable:$true] %s32_s29 }
   0x8   :  { %38 = dma.hbm_to_vmem [thread:$0]  %s31_s25, 512, %s33_s29, [#allocation6], %s285_s26, %s285_s26, %s286_s27  }
   0x9   :  { %278 = dma.done.wait [#allocation3], 256  }
   0xa   :  { %279 = vsyncadd [#allocation3], 4294967040 }
   0xb   :  { %280 = dma.done.wait [#allocation6], 512  }
   0xc   :  { %281 = vsyncadd [#allocation6], 4294966784  ;;  %v58_v0 = vld [vmem:[#allocation5 + $0x18] sm:$0xff]  ;;  %v57_v1 = vld [vmem:[#allocation5 + $0x10] sm:$0xff]  ;;  %vm63_vm0 = vcmask 261120   ;;  %v288_v15 = vmov 32.0  }
   0xd   :  { %82 = vmatpush.msra.mxu0 %v58_v0  ;;  %185 = vmatpush.msra.mxu1 %v58_v0  ;;  %v56_v2 = vld [vmem:[#allocation5 + $0x8] sm:$0xff]  ;;  %v55_v3 = vld [vmem:[#allocation5] sm:$0xff]  ;;  %v53_v4 = vld [vmem:[#allocation2] sm:$0xff]  ;;  %200 = vrcp.f32 %v288_v15  ;;  %vm160_vm7 = vcmask 257024   ;;  %s290_s11 = smov 64   ;;  %s291_s12 = smov 4  }
   0xe   :  { %v54_v5 = vld [vmem:[#allocation2 + $0x8] sm:$0xff]  ;;  %v197_v6 = vld [vmem:[%s348_s2] ss:$0 sm:$0xff] }
   0xf   :  { %83 = vmatpush.msra.mxu0 %v57_v1  ;;  %186 = vmatpush.msra.mxu1 %v57_v1  ;;  %v198_v46 = vld [vmem:[%s349_s3] ss:$0 sm:$0xff]  ;;  %s289_s3 = smov [#allocation7]  }
  0x10   :  { %v199_v49 = vld [vmem:[%s350_s4] ss:$0 sm:$0xff]  ;;  %s167_s8 = sshll.u32 %s289_s3, 4  ;;  %s169_s4 = sshll.u32 %s351_s5, 4  ;;  %s168_s8 = int_to_ptr.vmem [resolvable:$true] %s167_s8  ;;  %s170_s4 = int_to_ptr.hbm [resolvable:$true] %s169_s4 }
  0x11   :  { %84 = vmatpush.msra.mxu0 %v56_v2  ;;  %187 = vmatpush.msra.mxu1 %v56_v2 }
  0x13   :  { %85 = vmatpush.msra.mxu0 %v55_v3  ;;  %188 = vmatpush.msra.mxu1 %v55_v3  ;;  %v201_v16 = vpop.eup %200 }
  0x14   :  { %183 = vmatmul.msk.f32.vlgmr.msra.gmra.mxu0 %vm63_vm0, %v53_v4  ;;  %184 = vmatmul.msk.f32.vlgmr.msra.gmra.mxu1 %vm63_vm0, %v54_v5  ;;  %v102_v17 = vmul.f32 32.0, %v201_v16  ;;  %vm106_vm1 = vweird.f32 %v201_v16 }
  0x16   :  { %v103_v18 = vsub.f32 1.0, %v102_v17 }
  0x18   :  { %v104_v19 = vmul.f32 %v201_v16, %v103_v18 }
  0x1a   :  { %v105_v20 = vadd.f32 %v201_v16, %v104_v19 }
  0x1c   :  { %v107_v21 = vsel %vm106_vm1, %v201_v16, %v105_v20 }
  0x91   :  { %v87_v7 = vpop.f32.mrf.mxu0  ;;  %v90_v8 = vpop.f32.mrf.mxu1 }
  0x92   :  { %v88_v9 = vadd.f32 %v197_v6, %v87_v7  ;;  %v91_v11 = vadd.f32 %v197_v6, %v90_v8 }
  0x94   :  { %v93_v10 = vmax.f32 %v88_v9, 0.0  ;;  %v94_v13 = vmax.f32 %v91_v11, 0.0 }
  0x96   :  { %v95_v12 = vsel %vm63_vm0, %v93_v10, 0.0  ;;  %v98_v14 = vsel %vm63_vm0, %v94_v13, 0.0 }
  0x97   :  { %96 = vadd.xlane.f32.xlu0 %v95_v12 }
  0x9f   :  { %99 = vadd.xlane.f32.xlu0 %v98_v14 }
 0x10a   :  { %v97_v22 = vpop.xlane.xlu0 %96 }
 0x10b   :  { %v108_v23 = vmul.f32 %v107_v21, %v97_v22 }
 0x10d   :  { %v110_v24 = vsub.f32 %v93_v10, %v108_v23 }
 0x10f   :  { %v112_v25 = vmul.f32 %v110_v24, %v110_v24 }
 0x111   :  { %v114_v26 = vsel %vm63_vm0, %v112_v25, 0.0 }
 0x112   :  { %115 = vadd.xlane.f32.xlu1 %v114_v26  ;;  %v100_v27 = vpop.xlane.xlu0 %99 }
 0x113   :  { %v109_v28 = vmul.f32 %v107_v21, %v100_v27 }
 0x115   :  { %v111_v29 = vsub.f32 %v94_v13, %v109_v28 }
 0x117   :  { %v113_v30 = vmul.f32 %v111_v29, %v111_v29 }
 0x119   :  { %v117_v31 = vsel %vm63_vm0, %v113_v30, 0.0 }
 0x11a   :  { %118 = vadd.xlane.f32.xlu1 %v117_v31 }
 0x185   :  { %v116_v32 = vpop.xlane.xlu1 %115 }
 0x186   :  { %v120_v33 = vmul.f32 %v116_v32, %v107_v21 }
 0x188   :  { %v122_v34 = vadd.f32 1e-05, %v120_v33 }
 0x18a   :  { %202 = vrsqrt.f32 %v122_v34  ;;  %vm130_vm3 = vweird.f32 %v122_v34 }
 0x18d   :  { %v119_v35 = vpop.xlane.xlu1 %118 }
 0x18e   :  { %v121_v36 = vmul.f32 %v119_v35, %v107_v21 }
 0x190   :  { %v203_v37 = vpop.eup %202  ;;  %v123_v38 = vadd.f32 1e-05, %v121_v36 }
 0x191   :  { %v125_v39 = vmul.f32 %v203_v37, %v122_v34  ;;  %vm131_vm2 = vweird.f32 %v203_v37 }
 0x192   :  { %204 = vrsqrt.f32 %v123_v38  ;;  %vm132_vm4 = vmor %vm130_vm3, %vm131_vm2  ;;  %vm140_vm6 = vweird.f32 %v123_v38 }
 0x193   :  { %v126_v40 = vmul.f32 %v203_v37, %v125_v39 }
 0x195   :  { %v127_v41 = vmul.f32 0.5, %v126_v40 }
 0x197   :  { %v128_v42 = vsub.f32 1.5, %v127_v41 }
 0x198   :  { %v205_v43 = vpop.eup %204 }
 0x199   :  { %v129_v44 = vmul.f32 %v203_v37, %v128_v42  ;;  %v135_v45 = vmul.f32 %v205_v43, %v123_v38  ;;  %vm141_vm5 = vweird.f32 %v205_v43 }
 0x19a   :  { %vm142_vm8 = vmor %vm140_vm6, %vm141_vm5 }
 0x19b   :  { %v133_v47 = vsel %vm132_vm4, %v203_v37, %v129_v44  ;;  %v136_v48 = vmul.f32 %v205_v43, %v135_v45 }
 0x19c   :  { %v144_v50 = vmul.f32 %v133_v47, %v110_v24 }
 0x19d   :  { %v137_v51 = vmul.f32 0.5, %v136_v48 }
 0x19e   :  { %v150_v52 = vmul.f32 %v198_v46, %v144_v50 }
 0x19f   :  { %v138_v53 = vsub.f32 1.5, %v137_v51 }
 0x1a0   :  { %v156_v54 = vadd.f32 %v199_v49, %v150_v52 }
 0x1a1   :  { %v139_v55 = vmul.f32 %v205_v43, %v138_v53 }
 0x1a2   :  { %v158_v56 = vpack.c.bf16 %v156_v54, %v156_v54 }
 0x1a3   :  { %v143_v57 = vsel %vm142_vm8, %v205_v43, %v139_v55 }
 0x1a4   :  { %v145_v58 = vmul.f32 %v143_v57, %v111_v29  ;;  %161 = vst.msk [vmem:[#allocation7] sm:$0xf] %vm160_vm7, %v158_v56 }
 0x1a6   :  { %v151_v59 = vmul.f32 %v198_v46, %v145_v58 }
 0x1a8   :  { %v157_v60 = vadd.f32 %v199_v49, %v151_v59 }
 0x1aa   :  { %v159_v61 = vpack.c.bf16 %v157_v60, %v157_v60 }
 0x1ac   :  { %162 = vst.msk [vmem:[#allocation7 + $0x4] sm:$0xf] %vm160_vm7, %v159_v61 }
 0x1ad   :  { %175 = dma.vmem_to_hbm [thread:$0]  %s168_s8, 128, %s170_s4, [#allocation4], %s290_s11, %s290_s11, %s291_s12  }
 0x1ae   :  { %282 = dma.done.wait [#allocation4], 128  }
 0x1af   :  { %283 = vsyncadd [#allocation4], 4294967168 }
 0x1b0   :  { %180 = vsyncpa [#allocation3], 1 }
 0x1b1   :  { %181 = vsyncpa [#allocation6], 1 }
 0x1b2   :  { %182 = vsyncpa [#allocation4], 1 }

// kernel: tpu_custom_call.1
= control target key start
LH: loop header
LB: loop body
LE: loop exit
PB: predicated region body
PF: predicated region fallthrough
CT: control target
= control target key end

     0   :  { %10 = vsyncpa [#allocation3], 0  ;;  %s346_s0 = inlined_call_operand.hbm [shape: f32[16,32], index: 0, kind: input, shape index: {}]   ;;  %s347_s1 = inlined_call_operand.hbm [shape: f32[32,32], index: 1, kind: input, shape index: {}]   ;;  %s348_s2 = inlined_call_operand.vmem [shape: f32[1,32], index: 2, kind: input, shape index: {}]   ;;  %s349_s3 = inlined_call_operand.vmem [shape: f32[1,32], index: 3, kind: input, shape index: {}]   ;;  %s350_s4 = inlined_call_operand.vmem [shape: f32[1,32], index: 4, kind: input, shape index: {}]   ;;  %s351_s5 = inlined_call_operand.hbm [shape: bf16[16,32], index: 5, kind: output, shape index: {}]  }
   0x1   :  { %11 = vsyncpa [#allocation6], 0 }
   0x2   :  { %12 = vsyncpa [#allocation4], 0  ;;  %s17_s20 = sshll.u32 %s346_s0, 4  ;;  %s284_s21 = smov [#allocation2]   ;;  %s18_s20 = int_to_ptr.hbm [resolvable:$true] %s17_s20 }
   0x3   :  { %s19_s22 = sshll.u32 %s284_s21, 4  ;;  %s30_s25 = sshll.u32 %s347_s1, 4  ;;  %s20_s22 = int_to_ptr.vmem [resolvable:$true] %s19_s22  ;;  %s31_s25 = int_to_ptr.hbm [resolvable:$true] %s30_s25 }
   0x4   :  { %s285_s26 = smov 128   ;;  %s286_s27 = smov 8  }
   0x5   :  { %25 = dma.hbm_to_vmem [thread:$0]  %s18_s20, 256, %s20_s22, [#allocation3], %s285_s26, %s285_s26, %s286_s27  }
   0x6   :  { %s287_s28 = smov [#allocation5]  }
   0x7   :  { %s32_s29 = sshll.u32 %s287_s28, 4  ;;  %s33_s29 = int_to_ptr.vmem [resolvable:$true] %s32_s29 }
   0x8   :  { %38 = dma.hbm_to_vmem [thread:$0]  %s31_s25, 512, %s33_s29, [#allocation6], %s285_s26, %s285_s26, %s286_s27  }
   0x9   :  { %278 = dma.done.wait [#allocation3], 256  }
   0xa   :  { %279 = vsyncadd [#allocation3], 4294967040 }
   0xb   :  { %280 = dma.done.wait [#allocation6], 512  }
   0xc   :  { %281 = vsyncadd [#allocation6], 4294966784  ;;  %v58_v0 = vld [vmem:[#allocation5 + $0x18] sm:$0xff]  ;;  %v57_v1 = vld [vmem:[#allocation5 + $0x10] sm:$0xff]  ;;  %vm63_vm0 = vcmask 261120   ;;  %v288_v15 = vmov 32.0  }
   0xd   :  { %82 = vmatpush.msra.mxu0 %v58_v0  ;;  %185 = vmatpush.msra.mxu1 %v58_v0  ;;  %v56_v2 = vld [vmem:[#allocation5 + $0x8] sm:$0xff]  ;;  %v55_v3 = vld [vmem:[#allocation5] sm:$0xff]  ;;  %v53_v4 = vld [vmem:[#allocation2] sm:$0xff]  ;;  %200 = vrcp.f32 %v288_v15  ;;  %vm160_vm7 = vcmask 257024   ;;  %s290_s11 = smov 64   ;;  %s291_s12 = smov 4  }
   0xe   :  { %v54_v5 = vld [vmem:[#allocation2 + $0x8] sm:$0xff]  ;;  %v197_v6 = vld [vmem:[%s348_s2] ss:$0 sm:$0xff] }
   0xf   :  { %83 = vmatpush.msra.mxu0 %v57_v1  ;;  %186 = vmatpush.msra.mxu1 %v57_v1  ;;  %v198_v46 = vld [vmem:[%s349_s3] ss:$0 sm:$0xff]  ;;  %s289_s3 = smov [#allocation7]  }
  0x10   :  { %v199_v49 = vld [vmem:[%s350_s4] ss:$0 sm:$0xff]  ;;  %s167_s8 = sshll.u32 %s289_s3, 4  ;;  %s169_s4 = sshll.u32 %s351_s5, 4  ;;  %s168_s8 = int_to_ptr.vmem [resolvable:$true] %s167_s8  ;;  %s170_s4 = int_to_ptr.hbm [resolvable:$true] %s169_s4 }
  0x11   :  { %84 = vmatpush.msra.mxu0 %v56_v2  ;;  %187 = vmatpush.msra.mxu1 %v56_v2 }
  0x13   :  { %85 = vmatpush.msra.mxu0 %v55_v3  ;;  %188 = vmatpush.msra.mxu1 %v55_v3  ;;  %v201_v16 = vpop.eup %200 }
  0x14   :  { %183 = vmatmul.msk.f32.vlgmr.msra.gmra.mxu0 %vm63_vm0, %v53_v4  ;;  %184 = vmatmul.msk.f32.vlgmr.msra.gmra.mxu1 %vm63_vm0, %v54_v5  ;;  %v102_v17 = vmul.f32 32.0, %v201_v16  ;;  %vm106_vm1 = vweird.f32 %v201_v16 }
  0x16   :  { %v103_v18 = vsub.f32 1.0, %v102_v17 }
  0x18   :  { %v104_v19 = vmul.f32 %v201_v16, %v103_v18 }
  0x1a   :  { %v105_v20 = vadd.f32 %v201_v16, %v104_v19 }
  0x1c   :  { %v107_v21 = vsel %vm106_vm1, %v201_v16, %v105_v20 }
  0x91   :  { %v87_v7 = vpop.f32.mrf.mxu0  ;;  %v90_v8 = vpop.f32.mrf.mxu1 }
  0x92   :  { %v88_v9 = vadd.f32 %v197_v6, %v87_v7  ;;  %v91_v11 = vadd.f32 %v197_v6, %v90_v8 }
  0x94   :  { %v93_v10 = vmax.f32 %v88_v9, 0.0  ;;  %v94_v13 = vmax.f32 %v91_v11, 0.0 }
  0x96   :  { %v95_v12 = vsel %vm63_vm0, %v93_v10, 0.0  ;;  %v98_v14 = vsel %vm63_vm0, %v94_v13, 0.0 }
  0x97   :  { %96 = vadd.xlane.f32.xlu0 %v95_v12 }
  0x9f   :  { %99 = vadd.xlane.f32.xlu0 %v98_v14 }
 0x10a   :  { %v97_v22 = vpop.xlane.xlu0 %96 }
 0x10b   :  { %v108_v23 = vmul.f32 %v107_v21, %v97_v22 }
 0x10d   :  { %v110_v24 = vsub.f32 %v93_v10, %v108_v23 }
 0x10f   :  { %v112_v25 = vmul.f32 %v110_v24, %v110_v24 }
 0x111   :  { %v114_v26 = vsel %vm63_vm0, %v112_v25, 0.0 }
 0x112   :  { %115 = vadd.xlane.f32.xlu1 %v114_v26  ;;  %v100_v27 = vpop.xlane.xlu0 %99 }
 0x113   :  { %v109_v28 = vmul.f32 %v107_v21, %v100_v27 }
 0x115   :  { %v111_v29 = vsub.f32 %v94_v13, %v109_v28 }
 0x117   :  { %v113_v30 = vmul.f32 %v111_v29, %v111_v29 }
 0x119   :  { %v117_v31 = vsel %vm63_vm0, %v113_v30, 0.0 }
 0x11a   :  { %118 = vadd.xlane.f32.xlu1 %v117_v31 }
 0x185   :  { %v116_v32 = vpop.xlane.xlu1 %115 }
 0x186   :  { %v120_v33 = vmul.f32 %v116_v32, %v107_v21 }
 0x188   :  { %v122_v34 = vadd.f32 1e-05, %v120_v33 }
 0x18a   :  { %202 = vrsqrt.f32 %v122_v34  ;;  %vm130_vm3 = vweird.f32 %v122_v34 }
 0x18d   :  { %v119_v35 = vpop.xlane.xlu1 %118 }
 0x18e   :  { %v121_v36 = vmul.f32 %v119_v35, %v107_v21 }
 0x190   :  { %v203_v37 = vpop.eup %202  ;;  %v123_v38 = vadd.f32 1e-05, %v121_v36 }
 0x191   :  { %v125_v39 = vmul.f32 %v203_v37, %v122_v34  ;;  %vm131_vm2 = vweird.f32 %v203_v37 }
 0x192   :  { %204 = vrsqrt.f32 %v123_v38  ;;  %vm132_vm4 = vmor %vm130_vm3, %vm131_vm2  ;;  %vm140_vm6 = vweird.f32 %v123_v38 }
 0x193   :  { %v126_v40 = vmul.f32 %v203_v37, %v125_v39 }
 0x195   :  { %v127_v41 = vmul.f32 0.5, %v126_v40 }
 0x197   :  { %v128_v42 = vsub.f32 1.5, %v127_v41 }
 0x198   :  { %v205_v43 = vpop.eup %204 }
 0x199   :  { %v129_v44 = vmul.f32 %v203_v37, %v128_v42  ;;  %v135_v45 = vmul.f32 %v205_v43, %v123_v38  ;;  %vm141_vm5 = vweird.f32 %v205_v43 }
 0x19a   :  { %vm142_vm8 = vmor %vm140_vm6, %vm141_vm5 }
 0x19b   :  { %v133_v47 = vsel %vm132_vm4, %v203_v37, %v129_v44  ;;  %v136_v48 = vmul.f32 %v205_v43, %v135_v45 }
 0x19c   :  { %v144_v50 = vmul.f32 %v133_v47, %v110_v24 }
 0x19d   :  { %v137_v51 = vmul.f32 0.5, %v136_v48 }
 0x19e   :  { %v150_v52 = vmul.f32 %v198_v46, %v144_v50 }
 0x19f   :  { %v138_v53 = vsub.f32 1.5, %v137_v51 }
 0x1a0   :  { %v156_v54 = vadd.f32 %v199_v49, %v150_v52 }
 0x1a1   :  { %v139_v55 = vmul.f32 %v205_v43, %v138_v53 }
 0x1a2   :  { %v158_v56 = vpack.c.bf16 %v156_v54, %v156_v54 }
 0x1a3   :  { %v143_v57 = vsel %vm142_vm8, %v205_v43, %v139_v55 }
 0x1a4   :  { %v145_v58 = vmul.f32 %v143_v57, %v111_v29  ;;  %161 = vst.msk [vmem:[#allocation7] sm:$0xf] %vm160_vm7, %v158_v56 }
 0x1a6   :  { %v151_v59 = vmul.f32 %v198_v46, %v145_v58 }
 0x1a8   :  { %v157_v60 = vadd.f32 %v199_v49, %v151_v59 }
 0x1aa   :  { %v159_v61 = vpack.c.bf16 %v157_v60, %v157_v60 }
 0x1ac   :  { %162 = vst.msk [vmem:[#allocation7 + $0x4] sm:$0xf] %vm160_vm7, %v159_v61 }
 0x1ad   :  { %175 = dma.vmem_to_hbm [thread:$0]  %s168_s8, 128, %s170_s4, [#allocation4], %s290_s11, %s290_s11, %s291_s12  }
 0x1ae   :  { %282 = dma.done.wait [#allocation4], 128  }
 0x1af   :  { %283 = vsyncadd [#allocation4], 4294967168 }
 0x1b0   :  { %180 = vsyncpa [#allocation3], 1 }
 0x1b1   :  { %181 = vsyncpa [#allocation6], 1 }
 0x1b2   :  { %182 = vsyncpa [#allocation4], 1 }

</bundles_post_ra>
